<compile_context>
chip_gen: v6e
topology: v6e:2x2x1
jax: 0.10.0
libtpu: 0.0.40
codegen_flags: <defaults>
</compile_context>

<pallas_src>
import functools

import jax
import jax.numpy as jnp
from jax.experimental import pallas as pl
from jax.experimental.pallas import tpu as pltpu


# ----------------------------- Pallas kernel --------------------------------

def _fused_mlp_kernel(x_ref, w1_ref, b1_ref, w2_ref, b2_ref,
                      h_ref, y_ref, acc_ref):
    """Fused two-layer MLP for one batch tile.

    Grid = (batch_tiles [parallel], k_tiles [arbitrary, last]).

      acc    += x_k @ W1_k          (f32 VMEM accumulator over the K axis)
      hidden  = relu(acc + b1)      (f32, stored as bf16)   -- last k step
      logits  = hidden @ W2 + b2    (f32)                   -- last k step

    The hidden activation never leaves VMEM between the two matmuls.
    """
    k = pl.program_id(1)

    @pl.when(k == 0)
    def _():
        acc_ref[...] = jnp.zeros_like(acc_ref)

    # In-kernel f32 -> bf16 cast (VPU slot, hidden under MXU work).
    x = x_ref[...].astype(jnp.bfloat16)
    acc_ref[...] += jnp.dot(x, w1_ref[...],
                            preferred_element_type=jnp.float32)

    @pl.when(k == pl.num_programs(1) - 1)
    def _():
        h = jnp.maximum(acc_ref[...] + b1_ref[...], 0.0)       # f32 bias+relu
        h_bf16 = h.astype(jnp.bfloat16)
        h_ref[...] = h_bf16.astype(h_ref.dtype)
        y = jnp.dot(h_bf16, w2_ref[...],
                    preferred_element_type=jnp.float32) + b2_ref[...]
        y_ref[...] = y.astype(y_ref.dtype)


def _round_up(n, m):
    return ((n + m - 1) // m) * m


def _fused_mlp_impl(x, w1_bf16, b1_f32, w2_bf16, b2_f32, *,
                    block_b: int, hidden_dtype):
    B, D_IN = x.shape
    D_HID = w1_bf16.shape[1]
    D_OUT = w2_bf16.shape[1]
    # Lane-dense feature dims (full, unmasked vector stores; MXU fully fed).
    assert D_IN % 128 == 0 and D_HID % 128 == 0 and D_OUT % 128 == 0, (
        "feature dims must be multiples of 128 (use 256-multiples on v6e/v7x)")

    # Batch tile: multiple of 8 sublanes; clamp for tiny batches.
    block_b = min(block_b, _round_up(B, 8))
    assert block_b % 8 == 0

    # K tile over D_IN: prefer a 256-multiple (v6e/v7x MXU is 2x256^2).
    block_k = 512 if D_IN % 512 == 0 else D_IN
    assert D_IN % block_k == 0

    grid = (pl.cdiv(B, block_b), D_IN // block_k)

    # Explicit scoped-VMEM budget from the actual tile footprint
    # (double-buffered inputs/outputs + f32 accumulator), with headroom.
    hid_bytes = jnp.dtype(hidden_dtype).itemsize
    est = (2 * block_b * block_k * 4            # x tiles (f32)
           + 2 * block_k * D_HID * 2            # W1 tiles (bf16)
           + 2 * D_HID * D_OUT * 2              # W2 (bf16, grid-invariant)
           + 2 * (D_HID + D_OUT) * 4            # biases (f32)
           + 2 * block_b * D_HID * hid_bytes    # hidden out tiles
           + 2 * block_b * D_OUT * 4            # logits out tiles
           + block_b * D_HID * 4)               # accumulator scratch
    vmem_limit = min(max(2 * est, 32 * 1024 * 1024), 48 * 1024 * 1024)

    # NOTE: W2/b1/b2 have constant index_maps, so Mosaic fetches them once and
    # keeps them resident; the vmem budget above already assumes two buffers.
    # TODO(synk): for production D>=4096, additionally tile D_HID/D_OUT
    # (256-multiples) so both weight matrices fit v7x's 64 MiB VMEM.
    hidden, logits = pl.pallas_call(
        _fused_mlp_kernel,
        out_shape=(jax.ShapeDtypeStruct((B, D_HID), hidden_dtype),
                   jax.ShapeDtypeStruct((B, D_OUT), jnp.float32)),
        grid=grid,
        in_specs=[
            pl.BlockSpec((block_b, block_k), lambda i, k: (i, k)),   # x tile
            pl.BlockSpec((block_k, D_HID),   lambda i, k: (k, 0)),   # W1 tile
            pl.BlockSpec((1, D_HID),         lambda i, k: (0, 0)),   # b1
            pl.BlockSpec((D_HID, D_OUT),     lambda i, k: (0, 0)),   # W2
            pl.BlockSpec((1, D_OUT),         lambda i, k: (0, 0)),   # b2
        ],
        out_specs=(pl.BlockSpec((block_b, D_HID), lambda i, k: (i, 0)),
                   pl.BlockSpec((block_b, D_OUT), lambda i, k: (i, 0))),
        scratch_shapes=[pltpu.VMEM((block_b, D_HID), jnp.float32)],
        compiler_params=pltpu.CompilerParams(
            # Batch tiles independent -> shard across TCs on v7x megacore;
            # K axis is the reduction -> "arbitrary", last.
            dimension_semantics=("parallel", "arbitrary"),
            vmem_limit_bytes=vmem_limit,
        ),
    )(x, w1_bf16, b1_f32, w2_bf16, b2_f32)

    return hidden, logits


# One compiled unit: fused kernel only (no wrapper-side casts / pads / slices).
fused_mlp = jax.jit(
    functools.partial(_fused_mlp_impl),
    static_argnames=("block_b", "hidden_dtype"),
)


# --------------------------- Module definitions ------------------------------

class FusedMLPModule:
    """Sub-module: reads a tensor (or a named dict entry) and returns a dict
    {'hidden': relu(x@W1+b1), 'logits': hidden@W2+b2}. Both layers run inside
    a single Pallas kernel (one launch, intermediate kept in VMEM).

    Weights/biases are pre-cast once here (bf16 MXU operands, f32 biases) so
    the per-call path contains only the kernel launch.
    """

    def __init__(self, w1, b1, w2, b2, in_key=None,
                 hidden_key="hidden", out_key="logits",
                 block_b=128, hidden_dtype=jnp.bfloat16):
        self.in_key = in_key          # None => raw tensor input
        self.hidden_key = hidden_key
        self.out_key = out_key
        self.block_b = int(block_b)
        self.hidden_dtype = hidden_dtype
        # Pre-cast ONCE (perf feedback): bf16 weights, f32 (1, D) biases.
        self.w1 = jnp.asarray(w1, dtype=jnp.bfloat16)
        self.w2 = jnp.asarray(w2, dtype=jnp.bfloat16)
        self.b1 = jnp.asarray(b1, dtype=jnp.float32).reshape(1, -1)
        self.b2 = jnp.asarray(b2, dtype=jnp.float32).reshape(1, -1)

    def __call__(self, x):
        inp = x[self.in_key] if isinstance(x, dict) else x
        h, y = fused_mlp(inp, self.w1, self.b1, self.w2, self.b2,
                         block_b=self.block_b, hidden_dtype=self.hidden_dtype)
        return {self.hidden_key: h, self.out_key: y}


class SeqModels:
    """Faithful port of the PyTorch SeqModels forward semantics."""

    def __init__(self, modules):
        self.modules_list = list(modules)

    def forward(self, x):
        out = {}
        for module in self.modules_list:
            x = module(x)
            out.update(x)
        return out

    __call__ = forward


# --------------------------------- Main --------------------------------------

if __name__ == "__main__":
    key = jax.random.PRNGKey(0)
    k_x, k_w1, k_b1, k_w2, k_b2 = jax.random.split(key, 5)

    # Small demo shapes: 256-wide features (full v6e/v7x MXU pass), ragged
    # batch (200) to exercise the masked last tile; grid = (2, 1) so both
    # v7x TensorCores get a batch tile.
    B, D_IN, D_HID, D_OUT = 200, 256, 256, 256

    x = jax.random.normal(k_x, (B, D_IN), dtype=jnp.float32)
    w1 = jax.random.normal(k_w1, (D_IN, D_HID), dtype=jnp.float32) * 0.1
    b1 = jax.random.normal(k_b1, (D_HID,), dtype=jnp.float32) * 0.1
    w2 = jax.random.normal(k_w2, (D_HID, D_OUT), dtype=jnp.float32) * 0.1
    b2 = jax.random.normal(k_b2, (D_OUT,), dtype=jnp.float32) * 0.1

    model = SeqModels([
        FusedMLPModule(w1=w1, b1=b1, w2=w2, b2=b2, in_key=None,
                       hidden_key="hidden", out_key="logits"),
    ])

    out = model(x)
    for v in out.values():
        jax.block_until_ready(v)

    # Pure-JAX reference with the same bf16-input / f32-accumulate precision.
    xb = x.astype(jnp.bfloat16)
    w1b = w1.astype(jnp.bfloat16)
    w2b = w2.astype(jnp.bfloat16)
    ref_h32 = jnp.maximum(
        jnp.dot(xb, w1b, preferred_element_type=jnp.float32)
        + b1.reshape(1, -1), 0.0)
    ref_h = ref_h32.astype(jnp.bfloat16)
    ref_y = (jnp.dot(ref_h, w2b, preferred_element_type=jnp.float32)
             + b2.reshape(1, -1))

    assert out["hidden"].shape == (B, D_HID)
    assert out["logits"].shape == (B, D_OUT)
    assert out["hidden"].dtype == jnp.bfloat16
    assert jnp.allclose(out["hidden"].astype(jnp.float32),
                        ref_h.astype(jnp.float32), atol=2e-2, rtol=2e-2)
    assert jnp.allclose(out["logits"], ref_y, atol=2e-2, rtol=2e-2)

    print("KERNEL_OK")
</pallas_src>

<mosaic_0001>
module attributes {stable_mosaic.version = 11 : i64} {
  func.func @_fused_mlp_kernel(%arg0: i32, %arg1: i32, %arg2: memref<128x256xf32, #tpu.memory_space<vmem>>, %arg3: memref<256x256xbf16, #tpu.memory_space<vmem>>, %arg4: memref<1x256xf32, #tpu.memory_space<vmem>>, %arg5: memref<256x256xbf16, #tpu.memory_space<vmem>>, %arg6: memref<1x256xf32, #tpu.memory_space<vmem>>, %arg7: memref<128x256xbf16, #tpu.memory_space<vmem>>, %arg8: memref<128x256xf32, #tpu.memory_space<vmem>>, %arg9: memref<128x256xf32, #tpu.memory_space<vmem>>) attributes {dimension_semantics = [#tpu.dimension_semantics<parallel>, #tpu.dimension_semantics<arbitrary>], iteration_bounds = array<i64: 2, 1>, scalar_prefetch = 0 : i64, scratch_operands = 1 : i64, tpu.core_type = #tpu.core_type<tc>, window_params = [{transform_indices = @transform_0, window_bounds = array<i64: 128, 256>}, {transform_indices = @transform_1, window_bounds = array<i64: 256, 256>}, {pipeline_mode = #tpu.pipeline_mode<synchronous>, transform_indices = @transform_2, window_bounds = array<i64: 1, 256>}, {pipeline_mode = #tpu.pipeline_mode<synchronous>, transform_indices = @transform_3, window_bounds = array<i64: 256, 256>}, {pipeline_mode = #tpu.pipeline_mode<synchronous>, transform_indices = @transform_4, window_bounds = array<i64: 1, 256>}, {transform_indices = @transform_5, window_bounds = array<i64: 128, 256>}, {transform_indices = @transform_6, window_bounds = array<i64: 128, 256>}]} {
    %c0_i32 = arith.constant 0 : i32
    %0 = arith.cmpi eq, %arg1, %c0_i32 : i32
    %1 = arith.extui %0 : i1 to i32
    %c0_i32_0 = arith.constant 0 : i32
    %2 = arith.cmpi ne, %1, %c0_i32_0 : i32
    scf.if %2 {
      %cst_10 = arith.constant 0.000000e+00 : f32
      %13 = vector.broadcast %cst_10 : f32 to vector<128x256xf32>
      %c0_11 = arith.constant 0 : index
      %c0_12 = arith.constant 0 : index
      %14 = vector.load %arg9[%c0_11, %c0_12] : memref<128x256xf32, #tpu.memory_space<vmem>>, vector<128x256xf32>
      tpu.vector_store %arg9[%c0_11, %c0_12], %13 {strides = array<i32>} : memref<128x256xf32, #tpu.memory_space<vmem>>, vector<128x256xf32>,
    } else {
    }
    %c0 = arith.constant 0 : index
    %c0_1 = arith.constant 0 : index
    %3 = vector.load %arg2[%c0, %c0_1] : memref<128x256xf32, #tpu.memory_space<vmem>>, vector<128x256xf32>
    %4 = arith.truncf %3 : vector<128x256xf32> to vector<128x256xbf16>
    %c0_2 = arith.constant 0 : index
    %c0_3 = arith.constant 0 : index
    %5 = vector.load %arg9[%c0_2, %c0_3] : memref<128x256xf32, #tpu.memory_space<vmem>>, vector<128x256xf32>
    %c0_4 = arith.constant 0 : index
    %c0_5 = arith.constant 0 : index
    %6 = vector.load %arg3[%c0_4, %c0_5] : memref<256x256xbf16, #tpu.memory_space<vmem>>, vector<256x256xbf16>
    %cst = arith.constant dense<0.000000e+00> : vector<128x256xf32>
    %7 = tpu.matmul %4, %6, %cst {dimension_numbers = #tpu.dot_dimension_numbers<[1], [0], [0], [1], [0, 0, 1, 1], [], []>} : vector<128x256xbf16>, vector<256x256xbf16>, vector<128x256xf32> -> vector<128x256xf32>
    %8 = arith.addf %5, %7 : vector<128x256xf32>
    %c0_6 = arith.constant 0 : index
    %c0_7 = arith.constant 0 : index
    %9 = vector.load %arg9[%c0_6, %c0_7] : memref<128x256xf32, #tpu.memory_space<vmem>>, vector<128x256xf32>
    tpu.vector_store %arg9[%c0_6, %c0_7], %8 {strides = array<i32>} : memref<128x256xf32, #tpu.memory_space<vmem>>, vector<128x256xf32>,
    %c0_i32_8 = arith.constant 0 : i32
    %10 = arith.cmpi eq, %arg1, %c0_i32_8 : i32
    %11 = arith.extui %10 : i1 to i32
    %c0_i32_9 = arith.constant 0 : i32
    %12 = arith.cmpi ne, %11, %c0_i32_9 : i32
    scf.if %12 {
      %c0_10 = arith.constant 0 : index
      %c0_11 = arith.constant 0 : index
      %13 = vector.load %arg9[%c0_10, %c0_11] : memref<128x256xf32, #tpu.memory_space<vmem>>, vector<128x256xf32>
      %c0_12 = arith.constant 0 : index
      %c0_13 = arith.constant 0 : index
      %14 = vector.load %arg4[%c0_12, %c0_13] : memref<1x256xf32, #tpu.memory_space<vmem>>, vector<1x256xf32>
      %15 = vector.broadcast %14 : vector<1x256xf32> to vector<128x256xf32>
      %16 = arith.addf %13, %15 : vector<128x256xf32>
      %cst_14 = arith.constant 0.000000e+00 : f32
      %17 = vector.broadcast %cst_14 : f32 to vector<128x256xf32>
      %18 = arith.maximumf %16, %17 : vector<128x256xf32>
      %19 = arith.truncf %18 : vector<128x256xf32> to vector<128x256xbf16>
      %c0_15 = arith.constant 0 : index
      %c0_16 = arith.constant 0 : index
      %20 = vector.load %arg7[%c0_15, %c0_16] : memref<128x256xbf16, #tpu.memory_space<vmem>>, vector<128x256xbf16>
      tpu.vector_store %arg7[%c0_15, %c0_16], %19 {strides = array<i32>} : memref<128x256xbf16, #tpu.memory_space<vmem>>, vector<128x256xbf16>,
      %c0_17 = arith.constant 0 : index
      %c0_18 = arith.constant 0 : index
      %21 = vector.load %arg5[%c0_17, %c0_18] : memref<256x256xbf16, #tpu.memory_space<vmem>>, vector<256x256xbf16>
      %cst_19 = arith.constant dense<0.000000e+00> : vector<128x256xf32>
      %22 = tpu.matmul %19, %21, %cst_19 {dimension_numbers = #tpu.dot_dimension_numbers<[1], [0], [0], [1], [0, 0, 1, 1], [], []>} : vector<128x256xbf16>, vector<256x256xbf16>, vector<128x256xf32> -> vector<128x256xf32>
      %c0_20 = arith.constant 0 : index
      %c0_21 = arith.constant 0 : index
      %23 = vector.load %arg6[%c0_20, %c0_21] : memref<1x256xf32, #tpu.memory_space<vmem>>, vector<1x256xf32>
      %24 = vector.broadcast %23 : vector<1x256xf32> to vector<128x256xf32>
      %25 = arith.addf %22, %24 : vector<128x256xf32>
      %c0_22 = arith.constant 0 : index
      %c0_23 = arith.constant 0 : index
      %26 = vector.load %arg8[%c0_22, %c0_23] : memref<128x256xf32, #tpu.memory_space<vmem>>, vector<128x256xf32>
      tpu.vector_store %arg8[%c0_22, %c0_23], %25 {strides = array<i32>} : memref<128x256xf32, #tpu.memory_space<vmem>>, vector<128x256xf32>,
    } else {
    }
    return
  }
  func.func @transform_0(%arg0: i32, %arg1: i32) -> (i32, i32) {
    %c0_i32 = arith.constant 0 : i32
    return %arg0, %arg1 : i32, i32
  }
  func.func @transform_1(%arg0: i32, %arg1: i32) -> (i32, i32) {
    %c0_i32 = arith.constant 0 : i32
    %c0_i32_0 = arith.constant 0 : i32
    return %arg1, %c0_i32 : i32, i32
  }
  func.func @transform_2(%arg0: i32, %arg1: i32) -> (i32, i32) {
    %c0_i32 = arith.constant 0 : i32
    %c0_i32_0 = arith.constant 0 : i32
    %c0_i32_1 = arith.constant 0 : i32
    return %c0_i32, %c0_i32_0 : i32, i32
  }
  func.func @transform_3(%arg0: i32, %arg1: i32) -> (i32, i32) {
    %c0_i32 = arith.constant 0 : i32
    %c0_i32_0 = arith.constant 0 : i32
    %c0_i32_1 = arith.constant 0 : i32
    return %c0_i32, %c0_i32_0 : i32, i32
  }
  func.func @transform_4(%arg0: i32, %arg1: i32) -> (i32, i32) {
    %c0_i32 = arith.constant 0 : i32
    %c0_i32_0 = arith.constant 0 : i32
    %c0_i32_1 = arith.constant 0 : i32
    return %c0_i32, %c0_i32_0 : i32, i32
  }
  func.func @transform_5(%arg0: i32, %arg1: i32) -> (i32, i32) {
    %c0_i32 = arith.constant 0 : i32
    %c0_i32_0 = arith.constant 0 : i32
    return %arg0, %c0_i32 : i32, i32
  }
  func.func @transform_6(%arg0: i32, %arg1: i32) -> (i32, i32) {
    %c0_i32 = arith.constant 0 : i32
    %c0_i32_0 = arith.constant 0 : i32
    return %arg0, %c0_i32 : i32, i32
  }
}

</mosaic_0001>

<bundles_post_ra>
// kernel: _fused_mlp_impl.1
= control target key start
LH: loop header
LB: loop body
LE: loop exit
PB: predicated region body
PF: predicated region fallthrough
CT: control target
= control target key end

     0   :  { %s2629_s0 = inlined_call_operand.hbm [shape: f32[200,256], index: 0, kind: input, shape index: {}]   ;;  %s2630_s1 = inlined_call_operand.hbm [shape: bf16[256,256], index: 1, kind: input, shape index: {}]   ;;  %s2631_s2 = inlined_call_operand.vmem [shape: f32[1,256], index: 2, kind: input, shape index: {}]   ;;  %s2632_s3 = inlined_call_operand.hbm [shape: bf16[256,256], index: 3, kind: input, shape index: {}]   ;;  %s2633_s4 = inlined_call_operand.vmem [shape: f32[1,256], index: 4, kind: input, shape index: {}]   ;;  %s2634_s5 = inlined_call_operand.hbm [shape: bf16[200,256], index: 5, kind: output, shape index: {0}]   ;;  %s2635_s6 = inlined_call_operand.hbm [shape: f32[200,256], index: 6, kind: output, shape index: {1}]  }
   0x1   :  { %2639 = sst [smem:[#allocation16_spill]] %s2630_s1 }
   0x2   :  { %12 = vsyncpa [#allocation4], 0 }
   0x3   :  { %14 = vsyncpa [#allocation4 + $0x1], 0 }
   0x4   :  { %15 = vsyncpa [#allocation7], 0 }
   0x5   :  { %16 = vsyncpa [#allocation5], 0 }
   0x6   :  { %18 = vsyncpa [#allocation5 + $0x1], 0 }
   0x7   :  { %19 = vsyncpa [#allocation11], 0 }
   0x8   :  { %21 = vsyncpa [#allocation11 + $0x1], 0  ;;  %s2180_s21 = smov 0   ;;  %s2182_s22 = smov 0  }
   0x9   :  { %s2184_s23 = smov 0   ;;  %s2186_s24 = smov 0  }
   0xa   :  { %s2188_s25 = smov 0   ;;  %s2190_s26 = smov 0  }
   0xb LB: > { %s1608_s27 = sadd.s32 4294967295, %s2130_s26   ;;  %s1609_s28 = sadd.s32 4294967294, %s2130_s26   ;;  %s2130_s26 = sphi %s2190_s26, %s27_s26   ;;  %s2126_s25 = sphi %s2188_s25, %s2657_s25   ;;  %s2122_s24 = sphi %s2186_s24, %s2656_s24   ;;  %s2118_s23 = sphi %s2184_s23, %s2655_s23   ;;  %s2114_s22 = sphi %s2182_s22, %s2654_s22   ;;  %s2110_s21 = sphi %s2180_s21, %s2653_s21  }
   0xc   : > { %s39_s29 = sadd.s32 1, %s2126_s25  ;;  %s48_s30 = sadd.s32 1, %s2118_s23 }
   0xd   : > { %p41_p0 = scmp.ge.s32.totalorder %s39_s29, 2  ;;  %p55_p1 = scmp.ne.s32.totalorder %s2118_s23, %s2114_s22 }
   0xe   : > { %p56_p2 = scmp.eq.s32.totalorder %s2130_s26, 0  ;;  %p61_p3 = scmp.ne.s32.totalorder %s2114_s22, %s2110_s21 }
   0xf   : > { %s2659_s29 = smov (%p41_p0, %s39_s29), 0  ;;  %p2225_p5 = scmp.eq.s32.totalorder %s1608_s27, 0 }
  0x10   : > { %p2221_p4 = por %p56_p2, %p55_p1  ;;  %s43_s9 = ssub.s32 %s2126_s25, %s2659_s29 }
  0x11   : > { %s2641_s8 = scalar_select %p2225_p5, 1, 0 }
  0x12   : > { %p174_p6 = scmp.eq.s32.totalorder %s1608_s27, 1  ;;  %p46_p7 = scmp.eq.s32.totalorder %s43_s9, 0 }
  0x13   : > { %p2233_p8 = por %p2225_p5, %p61_p3  ;;  %p180_p10 = scmp.eq.s32.totalorder %s1609_s28, 1 }
  0x14   : > { %p2237_p9 = por %p174_p6, %p55_p1  ;;  %p1610_p12 = scmp.ge.s32.totalorder %s2130_s26, 1 }
  0x15   : > { %s2642_s10 = scalar_select %p2233_p8, 1, 0 }
  0x16   : > { %s2643_s11 = scalar_select %p2237_p9, 1, 0 }
  0x17   : > { %s2242_s12 = scalar_select %p46_p7, %s2118_s23, %s48_s30  }
  0x18   : > { %p2244_p11 = por %p180_p10, %p61_p3  ;;  %p213_p13 = scmp.lt.s32.totalorder %s2130_s26, 3 }
  0x19   : > { %s2132_s15 = smov [#allocation6]   ;;  %s2133_s17 = smov [#allocation8]  }
  0x1a   : > { %s2644_s13 = scalar_select %p2244_p11, 1, 0 }
  0x1b   : > { %p2250_p0 = pnand %p1610_p12, %p213_p13  ;;  %s229_s16 = sshll.u32 %s2132_s15, 4  ;;  %s230_s16 = int_to_ptr.vmem [resolvable:$true] %s229_s16 }
  0x1c   : > { %s245_s18 = sshll.u32 %s2133_s17, 4  ;;  %s1949_s20 = scalar_lea.vmem %s230_s16, 4096  ;;  %s246_s18 = int_to_ptr.vmem [resolvable:$true] %s245_s18 }
  0x1d   : > { %p1765_p1 = pneg %p2250_p0  ;;  %p1950_p6 = scmp.ne.s32.totalorder %s230_s16, %s1949_s20 }
  0x1e   : > { %p1957_p12 = scmp.lt.s32.totalorder %s230_s16, %s230_s16  ;;  %p1958_p13 = scmp.lt.s32.totalorder %s1949_s20, %s1949_s20 }
  0x1f   : > { %p2258_p2 = pnand %p1765_p1, %p2225_p5 }
  0x20   : > { %p1959_p11 = por %p1958_p13, %p1957_p12 }
  0x21   : > { %p1940_p3 = pneg %p2258_p2 }
  0x23   : > { %p1952_p7 = pnand %p1950_p6, %p1940_p3 }
  0x25   : > { %p1953_p10 = pneg %p1952_p7 }
  0x27   : > { %p1960_p9 = pnand %p1959_p11, %p1953_p10 }
  0x29   : > { %1963 = shalt.err (!%p1960_p9)
}
  0x2a   : > { %s2134_s27 = smov 128   ;;  %s2135_s28 = smov 8  }
  0x2b   : > { %s2647_s1 = sld [smem:[#allocation16_spill]]  ;;  %s1975_s15 = scalar_lea.vmem %s246_s18, 4096 }
  0x2c   : > { %p1976_p1 = scmp.ne.s32.totalorder %s246_s18, %s1975_s15  ;;  %p1983_p5 = scmp.lt.s32.totalorder %s246_s18, %s246_s18 }
  0x2d   : > { %p1984_p8 = scmp.lt.s32.totalorder %s1975_s15, %s1975_s15 }
  0x2e   : > { %p1978_p6 = pnand %p1976_p1, %p1940_p3 }
  0x2f   : > { %p1985_p12 = por %p1984_p8, %p1983_p5 }
  0x30   : > { %p1979_p7 = pneg %p1978_p6 }
  0x31   : > { %1768 = dma.hbm_to_vmem [thread:$0]  (!%p2258_p2), %s2647_s1, 4096, %s230_s16, [#allocation7], %s2134_s27, %s2134_s27, %s2135_s28  }
  0x32   : > { %p1986_p11 = pnand %p1985_p12, %p1979_p7 }
  0x34   : > { %1989 = shalt.err (!%p1986_p11)
}
  0x35   : > { %1771 = dma.hbm_to_vmem [thread:$0]  (!%p2258_p2), %s2632_s3, 4096, %s246_s18, [#allocation7], %s2134_s27, %s2134_s27, %s2135_s28  }
  0x36   : > { %p1613_p9 = scmp.ge.s32.totalorder %s2130_s26, 2 }
  0x38   : > { %258 = sbr.rel (%p1613_p9) target bundleno = 93 (0x5d), region = 32 }
  0x3d   : > { %261 = sbr.rel (!%p2221_p4) target bundleno = 93 (0x5d), region = 36  ;;  %s262_s16 = sand.u32 (%p2221_p4), 1, %s2118_s23  }
  0x3e   : > { %s1615_s30 = sshll.u32 (%p2221_p4), %s2126_s25, 4  ;;  %s1614_s9 = sshll.u32 (%p2221_p4), %s262_s16, 8 }
  0x3f   : > { %s269_s15 = ssub.s32 (%p2221_p4), 25, %s1615_s30  ;;  %s2290_s27 = scalar_lea.sflag (%p2221_p4), [#allocation4], %s262_s16 }
  0x40   : > { %p270_p5 = scmp.lt.s32.totalorder (%p2221_p4), %s269_s15, 16  ;;  %s266_s28 = scalar_lea.vmem (%p2221_p4), [#allocation3], %s1614_s9 }
  0x42   : > { %s2661_s15 = smov (!%p270_p5, %s269_s15), 16 }
  0x43   : > { %s2287_s19 = sshll.u32 %s2661_s15, 8 }
  0x44   : > { %s275_s18 = ssub.s32 4096, %s2287_s19 }
  0x45   : > { %276 = vsyncadd %s2290_s27, %s275_s18  ;;  %p1618_p4 = scmp.ne.s32.totalorder %s2287_s19, 0  ;;  %s1731_s7 = sshll.u32 %s2126_s25, 12 }
  0x46   : > { %s2298_s30 = scalar_lea.hbm %s2629_s0, %s1731_s7  ;;  %s283_s15 = sshll.u32 %s266_s28, 4  ;;  %s2300_s15 = int_to_ptr.vmem [resolvable:$true] %s283_s15 }
  0x47   : > { %s1990_s16 = scalar_lea.hbm %s2298_s30, %s2287_s19  ;;  %s1994_s1 = scalar_lea.hbm %s2629_s0, 6400 }
  0x48   : > { %p1991_p8 = scmp.ne.s32.totalorder %s2298_s30, %s1990_s16  ;;  %p1996_p10 = scmp.lt.s32.totalorder %s1994_s1, %s1990_s16 }
  0x4a   : > { %p1992_p2 = pnand %p1991_p8, %p1618_p4 }
  0x4c   : > { %p1993_p3 = pneg %p1992_p2 }
  0x4e   : > { %p1998_p13 = pnand %p1996_p10, %p1993_p3 }
  0x50   : > { %2001 = shalt.err (!%p1998_p13)
}
  0x51   : > { %s2002_s28 = scalar_lea.vmem %s2300_s15, %s2287_s19  ;;  %s2136_s7 = smov [#allocation3]  }
  0x52   : > { %p2003_p1 = scmp.ne.s32.totalorder %s2300_s15, %s2002_s28  ;;  %s2006_s17 = sshll.u32 %s2136_s7, 4  ;;  %s2007_s17 = int_to_ptr.vmem [resolvable:$false] %s2006_s17 }
  0x53   : > { %s2008_s20 = scalar_lea.vmem %s2007_s17, 8192  ;;  %p2009_p12 = scmp.lt.s32.totalorder %s2300_s15, %s2007_s17 }
  0x54   : > { %p2004_p6 = pnand %p2003_p1, %p1618_p4  ;;  %p2010_p11 = scmp.lt.s32.totalorder %s2008_s20, %s2002_s28 }
  0x56   : > { %p2005_p7 = pneg %p2004_p6  ;;  %p2011_p5 = por %p2010_p11, %p2009_p12 }
  0x58   : > { %p2012_p8 = pnand %p2011_p5, %p2005_p7 }
  0x5a   : > { %2015 = shalt.err (!%p2012_p8)
}
  0x5b   : > { %s2137_s1 = smov 256   ;;  %s2138_s16 = smov 16  }
  0x5c   : > { %289 = dma.hbm_to_vmem [thread:$0]  (%p1618_p4), %s2298_s30, %s2287_s19, %s2300_s15, %s2290_s27, %s2137_s1, %s2137_s1, %s2138_s16  }
  0x5d PF: > { %295 = sbr.rel (%p2250_p0) target bundleno = 692 (0x2b4), region = 40  ;;  %s2325_s9 = sand.u32 (!%p2250_p0), 1, %s2114_s22  }
  0x5e   : > { %s1624_s18 = sshll.u32 (!%p2250_p0), %s2325_s9, 8  ;;  %s298_s28 = scalar_lea.sflag (!%p2250_p0), [#allocation4], %s2325_s9 }
  0x5f   : > { %s2331_s7 = scalar_lea.vmem (!%p2250_p0), [#allocation3], %s1624_s18  ;;  %p2648_p2 = scmp.ne.s32.totalorder (!%p2250_p0), %s2642_s10, 0 }
  0x62   : > { %2093 = dma.done.wait (%p2648_p2), %s298_s28, 4096  }
  0x63   : > { %2095 = vsyncadd (%p2648_p2), %s298_s28, 4294963200  ;;  %p2649_p4 = scmp.ne.s32.totalorder %s2641_s8, 0 }
  0x65   : > { %2097 = dma.done.wait (%p2649_p4), [#allocation7], 8192  }
  0x66   : > { %2099 = vsyncadd (%p2649_p4), [#allocation7], 4294959104  ;;  %v1842_v0 = vld [vmem:[#allocation6 + $0x74] ss:$8 sps:$4 sm:$0xff]   ;;  %v1844_v1 = vld [vmem:[#allocation6 + $0x70] ss:$8 sps:$4 sm:$0xff]  }
  0x67   : > { %671 = vmatprep.subr.bf16.mxu0 %v1842_v0  ;;  %v1845_v2 = vld [vmem:[#allocation6 + $0x64] ss:$8 sps:$4 sm:$0xff]   ;;  %v1847_v3 = vld [vmem:[#allocation6 + $0x60] ss:$8 sps:$4 sm:$0xff]   ;;  %v1848_v4 = vld [vmem:[#allocation6 + $0x54] ss:$8 sps:$4 sm:$0xff]  }
  0x68   : > { %672 = vmatpush1.bf16.msra.mxu0 %v1844_v1  ;;  %v1850_v5 = vld [vmem:[#allocation6 + $0x50] ss:$8 sps:$4 sm:$0xff]   ;;  %v1851_v6 = vld [vmem:[#allocation6 + $0x44] ss:$8 sps:$4 sm:$0xff]   ;;  %v1853_v7 = vld [vmem:[#allocation6 + $0x40] ss:$8 sps:$4 sm:$0xff]  }
  0x69   : > { %673 = vmatprep.subr.bf16.mxu0 %v1845_v2  ;;  %v1854_v8 = vld [vmem:[#allocation6 + $0x34] ss:$8 sps:$4 sm:$0xff]   ;;  %v1856_v9 = vld [vmem:[#allocation6 + $0x30] ss:$8 sps:$4 sm:$0xff]   ;;  %v1857_v10 = vld [vmem:[#allocation6 + $0x24] ss:$8 sps:$4 sm:$0xff]  }
  0x6a   : > { %v1859_v11 = vld [vmem:[#allocation6 + $0x20] ss:$8 sps:$4 sm:$0xff]   ;;  %v1860_v12 = vld [vmem:[#allocation6 + $0x14] ss:$8 sps:$4 sm:$0xff]   ;;  %v1862_v16 = vld [vmem:[#allocation6 + $0x10] ss:$8 sps:$4 sm:$0xff]  }
  0x6b   : > { %v400_v13 = vld [vmem:[%s2331_s7 + $0x8] sm:$0xff]  ;;  %v402_v14 = vld [vmem:[%s2331_s7 + $0x18] sm:$0xff]  ;;  %v399_v50 = vld [vmem:[%s2331_s7] sm:$0xff]  ;;  %s1627_s14 = sshll.u32 %s2325_s9, 7  ;;  %s2453_s15 = scalar_lea.vmem [#allocation10], %s1624_s18 }
  0x6c   : > { %674 = vmatpush1.bf16.msra.mxu0 %v1847_v3  ;;  %v432_v15 = vpack.c.bf16 %v402_v14, %v400_v13  ;;  %v1863_v17 = vld [vmem:[#allocation6 + $0x4] ss:$8 sps:$4 sm:$0xff]   ;;  %v1865_v18 = vld [vmem:[#allocation6] ss:$8 sps:$4 sm:$0xff]   ;;  %v1866_v19 = vld [vmem:[#allocation6 + $0xf4] ss:$8 sps:$4 sm:$0xff]  }
  0x6d   : > { %675 = vmatprep.subr.bf16.mxu0 %v1848_v4  ;;  %v1868_v20 = vld [vmem:[#allocation6 + $0xf0] ss:$8 sps:$4 sm:$0xff]   ;;  %v1869_v21 = vld [vmem:[#allocation6 + $0xe4] ss:$8 sps:$4 sm:$0xff]   ;;  %v1890_v22 = vld [vmem:[#allocation8 + $0x74] ss:$8 sps:$4 sm:$0xff]  }
  0x6e   : > { %703 = vmatprep.mubr.bf16.mxu0 %v432_v15  ;;  %v1892_v23 = vld [vmem:[#allocation8 + $0x70] ss:$8 sps:$4 sm:$0xff]   ;;  %v1871_v24 = vld [vmem:[#allocation6 + $0xe0] ss:$8 sps:$4 sm:$0xff]   ;;  %1275 = vmatprep.subr.bf16.mxu1 %v1890_v22  ;;  %v1893_v25 = vld [vmem:[#allocation8 + $0x64] ss:$8 sps:$4 sm:$0xff]  }
  0x6f   : > { %v1872_v26 = vld [vmem:[#allocation6 + $0xd4] ss:$8 sps:$4 sm:$0xff]   ;;  %1276 = vmatpush1.bf16.msra.mxu1 %v1892_v23  ;;  %v1895_v27 = vld [vmem:[#allocation8 + $0x60] ss:$8 sps:$4 sm:$0xff]   ;;  %v1874_v29 = vld [vmem:[#allocation6 + $0xd0] ss:$8 sps:$4 sm:$0xff]  }
  0x70   : > { %676 = vmatpush1.bf16.msra.mxu0 %v1850_v5  ;;  %1277 = vmatprep.subr.bf16.mxu1 %v1893_v25  ;;  %v1896_v28 = vld [vmem:[#allocation8 + $0x54] ss:$8 sps:$4 sm:$0xff]   ;;  %v1875_v30 = vld [vmem:[#allocation6 + $0xc4] ss:$8 sps:$4 sm:$0xff]   ;;  %v1898_v31 = vld [vmem:[#allocation8 + $0x50] ss:$8 sps:$4 sm:$0xff]  }
  0x71   : > { %677 = vmatprep.subr.bf16.mxu0 %v1851_v6  ;;  %v1899_v32 = vld [vmem:[#allocation8 + $0x44] ss:$8 sps:$4 sm:$0xff]   ;;  %v1877_v33 = vld [vmem:[#allocation6 + $0xc0] ss:$8 sps:$4 sm:$0xff]   ;;  %v1878_v34 = vld [vmem:[#allocation6 + $0xb4] ss:$8 sps:$4 sm:$0xff]  }
  0x72   : > { %v1901_v35 = vld [vmem:[#allocation8 + $0x40] ss:$8 sps:$4 sm:$0xff]   ;;  %v1902_v36 = vld [vmem:[#allocation8 + $0x34] ss:$8 sps:$4 sm:$0xff]   ;;  %v1880_v37 = vld [vmem:[#allocation6 + $0xb0] ss:$8 sps:$4 sm:$0xff]  }
  0x73   : > { %1278 = vmatpush1.bf16.msra.mxu1 %v1895_v27  ;;  %v1881_v38 = vld [vmem:[#allocation6 + $0xa4] ss:$8 sps:$4 sm:$0xff]   ;;  %v1904_v39 = vld [vmem:[#allocation8 + $0x30] ss:$8 sps:$4 sm:$0xff]   ;;  %v1883_v41 = vld [vmem:[#allocation6 + $0xa0] ss:$8 sps:$4 sm:$0xff]  }
  0x74   : > { %678 = vmatpush1.bf16.msra.mxu0 %v1853_v7  ;;  %1279 = vmatprep.subr.bf16.mxu1 %v1896_v28  ;;  %v1905_v40 = vld [vmem:[#allocation8 + $0x24] ss:$8 sps:$4 sm:$0xff]   ;;  %v1907_v42 = vld [vmem:[#allocation8 + $0x20] ss:$8 sps:$4 sm:$0xff]   ;;  %v1884_v43 = vld [vmem:[#allocation6 + $0x94] ss:$8 sps:$4 sm:$0xff]  }
  0x75   : > { %679 = vmatprep.subr.bf16.mxu0 %v1854_v8  ;;  %v1908_v44 = vld [vmem:[#allocation8 + $0x14] ss:$8 sps:$4 sm:$0xff]   ;;  %v1886_v45 = vld [vmem:[#allocation6 + $0x90] ss:$8 sps:$4 sm:$0xff]   ;;  %v1887_v47 = vld [vmem:[#allocation6 + $0x84] ss:$8 sps:$4 sm:$0xff]  }
  0x76   : > { %v1910_v46 = vld [vmem:[#allocation8 + $0x10] ss:$8 sps:$4 sm:$0xff]   ;;  %v1911_v48 = vld [vmem:[#allocation8 + $0x4] ss:$8 sps:$4 sm:$0xff]   ;;  %v1889_v49 = vld [vmem:[#allocation6 + $0x80] ss:$8 sps:$4 sm:$0xff]  }
  0x77   : > { %1280 = vmatpush1.bf16.msra.mxu1 %v1898_v31  ;;  %v401_v51 = vld [vmem:[%s2331_s7 + $0x10] sm:$0xff]  ;;  %v1913_v52 = vld [vmem:[#allocation8] ss:$8 sps:$4 sm:$0xff]   ;;  %v406_v54 = vld [vmem:[%s2331_s7 + $0x38] sm:$0xff]  ;;  %s2393_s19 = scalar_lea.vmem [#allocation9], %s1627_s14  ;;  %s1421_s17 = scalar_lea.sflag [#allocation5], %s2325_s9 }
  0x78   : > { %680 = vmatpush1.bf16.msra.mxu0 %v1856_v9  ;;  %1281 = vmatprep.subr.bf16.mxu1 %v1899_v32  ;;  %v404_v53 = vld [vmem:[%s2331_s7 + $0x28] sm:$0xff]  ;;  %v1914_v55 = vld [vmem:[#allocation8 + $0xf4] ss:$8 sps:$4 sm:$0xff]   ;;  %v431_v56 = vpack.c.bf16 %v401_v51, %v399_v50  ;;  %v1916_v58 = vld [vmem:[#allocation8 + $0xf0] ss:$8 sps:$4 sm:$0xff]   ;;  %s1426_s20 = scalar_lea.sflag [#allocation11], %s2325_s9 }
  0x79   : > { %681 = vmatprep.subr.bf16.mxu0 %v1857_v10  ;;  %v434_v57 = vpack.c.bf16 %v406_v54, %v404_v53  ;;  %v1917_v59 = vld [vmem:[#allocation8 + $0xe4] ss:$8 sps:$4 sm:$0xff]   ;;  %v405_v61 = vld [vmem:[%s2331_s7 + $0x30] sm:$0xff]  ;;  %v1919_v62 = vld [vmem:[#allocation8 + $0xe0] ss:$8 sps:$4 sm:$0xff]   ;;  %p2650_p0 = scmp.ne.s32.totalorder %s2643_s11, 0 }
  0x7a   : > { %v403_v60 = vld [vmem:[%s2331_s7 + $0x20] sm:$0xff]  ;;  %v408_v63 = vld [vmem:[%s2331_s7 + $0x48] sm:$0xff]  ;;  %v410_v0 = vld [vmem:[%s2331_s7 + $0x58] sm:$0xff]  ;;  %s1711_s1 = sshll.u32 (%p2650_p0), %s2122_s24, 4 }
  0x7b   : > { %1282 = vmatpush1.bf16.msra.mxu1 %v1901_v35  ;;  %v1920_v1 = vld [vmem:[#allocation8 + $0xd4] ss:$8 sps:$4 sm:$0xff]   ;;  %v433_v2 = vpack.c.bf16 %v405_v61, %v403_v60  ;;  %v436_v3 = vpack.c.bf16 %v410_v0, %v408_v63  ;;  %v1922_v4 = vld [vmem:[#allocation8 + $0xd0] ss:$8 sps:$4 sm:$0xff]   ;;  %v1923_v5 = vld [vmem:[#allocation8 + $0xc4] ss:$8 sps:$4 sm:$0xff]  }
  0x7c   : > { %682 = vmatpush1.bf16.msra.mxu0 %v1859_v11  ;;  %1283 = vmatprep.subr.bf16.mxu1 %v1902_v36  ;;  %v407_v6 = vld [vmem:[%s2331_s7 + $0x40] sm:$0xff]  ;;  %v409_v7 = vld [vmem:[%s2331_s7 + $0x50] sm:$0xff]  ;;  %v412_v9 = vld [vmem:[%s2331_s7 + $0x68] sm:$0xff]  ;;  %s1434_s16 = ssub.s32 (%p2650_p0), 25, %s1711_s1 }
  0x7d   : > { %683 = vmatprep.subr.bf16.mxu0 %v1860_v12  ;;  %v1925_v8 = vld [vmem:[#allocation8 + $0xc0] ss:$8 sps:$4 sm:$0xff]   ;;  %v414_v10 = vld [vmem:[%s2331_s7 + $0x78] sm:$0xff]  ;;  %v435_v12 = vpack.c.bf16 %v409_v7, %v407_v6  ;;  %v417_v22 = vld [vmem:[%s2331_s7 + $0x90] sm:$0xff]  ;;  %p1435_p3 = scmp.lt.s32.totalorder (%p2650_p0), %s1434_s16, 16 }
  0x7e   : > { %v1926_v11 = vld [vmem:[#allocation8 + $0xb4] ss:$8 sps:$4 sm:$0xff]   ;;  %v438_v13 = vpack.c.bf16 %v414_v10, %v412_v9  ;;  %v1928_v14 = vld [vmem:[#allocation8 + $0xb0] ss:$8 sps:$4 sm:$0xff]   ;;  %v411_v15 = vld [vmem:[%s2331_s7 + $0x60] sm:$0xff] }
  0x7f   : > { %1284 = vmatpush1.bf16.msra.mxu1 %v1904_v39  ;;  %v420_v23 = vld [vmem:[%s2331_s7 + $0xa8] sm:$0xff]  ;;  %v419_v27 = vld [vmem:[%s2331_s7 + $0xa0] sm:$0xff]  ;;  %v421_v28 = vld [vmem:[%s2331_s7 + $0xb0] sm:$0xff] }
  0x80   : > { %684 = vmatpush1.bf16.msra.mxu0 %v1862_v16  ;;  %1285 = vmatprep.subr.bf16.mxu1 %v1905_v40  ;;  %v413_v16 = vld [vmem:[%s2331_s7 + $0x70] sm:$0xff]  ;;  %v441_v31 = vpack.c.bf16 %v421_v28, %v419_v27  ;;  %v428_v35 = vld [vmem:[%s2331_s7 + $0xe8] sm:$0xff]  ;;  %v430_v36 = vld [vmem:[%s2331_s7 + $0xf8] sm:$0xff] }
  0x81   : > { %685 = vmatprep.subr.bf16.mxu0 %v1863_v17  ;;  %v416_v17 = vld [vmem:[%s2331_s7 + $0x88] sm:$0xff]  ;;  %v427_v39 = vld [vmem:[%s2331_s7 + $0xe0] sm:$0xff]  ;;  %v429_v40 = vld [vmem:[%s2331_s7 + $0xf0] sm:$0xff] }
  0x82   : > { %v883_v51 = vld [vmem:[%s2631_s2] sm:$0x3] }
  0x83   : > { %1286 = vmatpush1.bf16.msra.mxu1 %v1907_v42  ;;  %v1929_v42 = vld [vmem:[#allocation8 + $0xa4] ss:$8 sps:$4 sm:$0xff]  }
  0x84   : > { %686 = vmatpush1.bf16.msra.mxu0 %v1865_v18  ;;  %1287 = vmatprep.subr.bf16.mxu1 %v1908_v44  ;;  %v418_v18 = vld [vmem:[%s2331_s7 + $0x98] sm:$0xff] }
  0x85   : > { %687 = vmatprep.subr.bf16.mxu0 %v1866_v19  ;;  %v437_v19 = vpack.c.bf16 %v413_v16, %v411_v15  ;;  %v1932_v44 = vld [vmem:[#allocation8 + $0x94] ss:$8 sps:$4 sm:$0xff]  }
  0x87   : > { %1288 = vmatpush1.bf16.msra.mxu1 %v1910_v46  ;;  %v1935_v46 = vld [vmem:[#allocation8 + $0x84] ss:$8 sps:$4 sm:$0xff]  }
  0x88   : > { %688 = vmatpush2.bf16.msra.mxu0 %v1868_v20  ;;  %1289 = vmatprep.subr.bf16.mxu1 %v1911_v48  ;;  %v440_v20 = vpack.c.bf16 %v418_v18, %v416_v17  ;;  %v885_v48 = vlaneseq }
  0x89   : > { %689 = vmatprep.subr.bf16.mxu0 %v1869_v21  ;;  %v415_v21 = vld [vmem:[%s2331_s7 + $0x80] sm:$0xff] }
  0x8a   : > { %v439_v25 = vpack.c.bf16 %v417_v22, %v415_v21 }
  0x8b   : > { %1290 = vmatpush1.bf16.msra.mxu1 %v1913_v52 }
  0x8c   : > { %690 = vmatpush2.bf16.msra.mxu0 %v1871_v24  ;;  %1291 = vmatprep.subr.bf16.mxu1 %v1914_v55  ;;  %v422_v24 = vld [vmem:[%s2331_s7 + $0xb8] sm:$0xff] }
  0x8d   : > { %691 = vmatprep.subr.bf16.mxu0 %v1872_v26  ;;  %v442_v26 = vpack.c.bf16 %v422_v24, %v420_v23 }
  0x8f   : > { %1292 = vmatpush2.bf16.msra.mxu1 %v1916_v58 }
  0x90   : > { %692 = vmatpush2.bf16.msra.mxu0 %v1874_v29  ;;  %1293 = vmatprep.subr.bf16.mxu1 %v1917_v59  ;;  %v424_v29 = vld [vmem:[%s2331_s7 + $0xc8] sm:$0xff] }
  0x91   : > { %693 = vmatprep.subr.bf16.mxu0 %v1875_v30  ;;  %v426_v30 = vld [vmem:[%s2331_s7 + $0xd8] sm:$0xff] }
  0x92   : > { %v444_v32 = vpack.c.bf16 %v426_v30, %v424_v29 }
  0x93   : > { %1294 = vmatpush2.bf16.msra.mxu1 %v1919_v62 }
  0x94   : > { %694 = vmatpush2.bf16.msra.mxu0 %v1877_v33  ;;  %1295 = vmatprep.subr.bf16.mxu1 %v1920_v1  ;;  %v423_v33 = vld [vmem:[%s2331_s7 + $0xc0] sm:$0xff] }
  0x95   : > { %695 = vmatprep.subr.bf16.mxu0 %v1878_v34  ;;  %v425_v34 = vld [vmem:[%s2331_s7 + $0xd0] sm:$0xff] }
  0x97   : > { %1296 = vmatpush2.bf16.msra.mxu1 %v1922_v4 }
  0x98   : > { %696 = vmatpush2.bf16.msra.mxu0 %v1880_v37  ;;  %1297 = vmatprep.subr.bf16.mxu1 %v1923_v5  ;;  %v443_v37 = vpack.c.bf16 %v425_v34, %v423_v33 }
  0x99   : > { %697 = vmatprep.subr.bf16.mxu0 %v1881_v38  ;;  %v446_v38 = vpack.c.bf16 %v430_v36, %v428_v35 }
  0x9b   : > { %1298 = vmatpush2.bf16.msra.mxu1 %v1925_v8 }
  0x9c   : > { %698 = vmatpush2.bf16.msra.mxu0 %v1883_v41  ;;  %1299 = vmatprep.subr.bf16.mxu1 %v1926_v11  ;;  %v445_v41 = vpack.c.bf16 %v429_v40, %v427_v39 }
  0x9d   : > { %699 = vmatprep.subr.bf16.mxu0 %v1884_v43  ;;  %v1931_v43 = vld [vmem:[#allocation8 + $0xa0] ss:$8 sps:$4 sm:$0xff]  }
  0x9f   : > { %1300 = vmatpush2.bf16.msra.mxu1 %v1928_v14 }
  0xa0   : > { %700 = vmatpush2.bf16.msra.mxu0 %v1886_v45  ;;  %1301 = vmatprep.subr.bf16.mxu1 %v1929_v42  ;;  %v1934_v45 = vld [vmem:[#allocation8 + $0x90] ss:$8 sps:$4 sm:$0xff]  }
  0xa1   : > { %701 = vmatprep.subr.bf16.mxu0 %v1887_v47  ;;  %v1937_v47 = vld [vmem:[#allocation8 + $0x80] ss:$8 sps:$4 sm:$0xff]  }
  0xa3   : > { %1302 = vmatpush2.bf16.msra.mxu1 %v1931_v43 }
  0xa4   : > { %702 = vmatpush2.bf16.msra.mxu0 %v1889_v49  ;;  %1303 = vmatprep.subr.bf16.mxu1 %v1932_v44  ;;  %v2373_v49 = vshrl.u32 %v885_v48, 7 }
  0xa6   : > { %v887_v50 = vsub.s32 0, %v2373_v49  ;;  %v891_v52 = vsub.s32 1, %v2373_v49 }
  0xa7   : > { %704 = vmatmul.mubr.bf16.vlgmr.msra.gmra.mxu0 %v431_v56  ;;  %1304 = vmatpush2.bf16.msra.mxu1 %v1934_v45 }
  0xa8   : > { %713 = vmatprep.mubr.bf16.mxu0 %v434_v57  ;;  %1305 = vmatprep.subr.bf16.mxu1 %v1935_v46  ;;  %v2382_v53 = vrot.slane %v883_v51, %v887_v50  ;;  %v2386_v54 = vrot.slane %v883_v51, %v891_v52 }
  0xab   : > { %1306 = vmatpush2.bf16.msra.mxu1 %v1937_v47 }
  0xaf   : > { %714 = vmatmul.mubr.bf16.gmra.mxu0 %v433_v2 }
  0xb0   : > { %723 = vmatprep.mubr.bf16.mxu0 %v436_v3 }
  0xb7   : > { %724 = vmatmul.mubr.bf16.gmra.mxu0 %v435_v12 }
  0xb8   : > { %733 = vmatprep.mubr.bf16.mxu0 %v438_v13 }
  0xbf   : > { %734 = vmatmul.mubr.bf16.gmra.mxu0 %v437_v19 }
  0xc0   : > { %743 = vmatprep.mubr.bf16.mxu0 %v440_v20 }
  0xc7   : > { %744 = vmatmul.mubr.bf16.gmra.mxu0 %v439_v25 }
  0xc8   : > { %753 = vmatprep.mubr.bf16.mxu0 %v442_v26 }
  0xcf   : > { %754 = vmatmul.mubr.bf16.gmra.mxu0 %v441_v31 }
  0xd0   : > { %763 = vmatprep.mubr.bf16.mxu0 %v444_v32 }
  0xd7   : > { %764 = vmatmul.mubr.bf16.gmra.mxu0 %v443_v37 }
  0xd8   : > { %773 = vmatprep.mubr.bf16.mxu0 %v446_v38 }
  0xdf   : > { %774 = vmatmul.mubr.bf16.gmra.mxu0 %v445_v41 }
 0x167   : > { %v705_v55 = vpop.f32.mrf.mxu0 }
 0x168   : > { %v895_v56 = vadd.f32 %v2382_v53, %v705_v55 }
 0x169   : > { %v707_v57 = vpop.f32.mrf.mxu0 }
 0x16a   : > { %v896_v58 = vadd.f32 %v2386_v54, %v707_v57  ;;  %v927_v60 = vmax.f32 %v895_v56, 0.0 }
 0x16b   : > { %v709_v59 = vpop.f32.mrf.mxu0 }
 0x16c   : > { %v928_v61 = vmax.f32 %v896_v58, 0.0  ;;  %v897_v62 = vadd.f32 %v2382_v53, %v709_v59 }
 0x16d   : > { %v711_v63 = vpop.f32.mrf.mxu0 }
 0x16e   : > { %v1732_v0 = vpack.c.bf16 %v928_v61, %v927_v60  ;;  %v898_v1 = vadd.f32 %v2386_v54, %v711_v63  ;;  %v929_v2 = vmax.f32 %v897_v62, 0.0 }
 0x16f   : > { %v715_v3 = vpop.f32.mrf.mxu0 }
 0x170   : > { %1055 = vst [vmem:[%s2393_s19] sm:$0xff] %v1732_v0  ;;  %v930_v4 = vmax.f32 %v898_v1, 0.0  ;;  %v899_v5 = vadd.f32 %v2382_v53, %v715_v3  ;;  %v959_v10 = vpack.c.bf16 %v929_v2, %v927_v60 }
 0x171   : > { %v717_v6 = vpop.f32.mrf.mxu0 }
 0x172   : > { %v1733_v7 = vpack.c.bf16 %v930_v4, %v929_v2  ;;  %v900_v8 = vadd.f32 %v2386_v54, %v717_v6  ;;  %v960_v9 = vpack.c.bf16 %v930_v4, %v928_v61  ;;  %v931_v12 = vmax.f32 %v899_v5, 0.0 }
 0x173   : > { %v719_v11 = vpop.f32.mrf.mxu0 }
 0x174   : > { %1056 = vst [vmem:[%s2393_s19 + $0x8] sm:$0xff] %v1733_v7  ;;  %v932_v13 = vmax.f32 %v900_v8, 0.0  ;;  %v901_v14 = vadd.f32 %v2382_v53, %v719_v11  ;;  %1307 = vmatprep.mubr.bf16.mxu1 %v960_v9 }
 0x175   : > { %v721_v15 = vpop.f32.mrf.mxu0  ;;  %1308 = vmatmul.mubr.bf16.vlgmr.msra.gmra.mxu1 %v959_v10 }
 0x176   : > { %v1734_v16 = vpack.c.bf16 %v932_v13, %v931_v12  ;;  %v902_v17 = vadd.f32 %v2386_v54, %v721_v15  ;;  %v933_v18 = vmax.f32 %v901_v14, 0.0 }
 0x177   : > { %v725_v19 = vpop.f32.mrf.mxu0 }
 0x178   : > { %1057 = vst [vmem:[%s2393_s19 + $0x10] sm:$0xff] %v1734_v16  ;;  %v934_v20 = vmax.f32 %v902_v17, 0.0  ;;  %v903_v21 = vadd.f32 %v2382_v53, %v725_v19  ;;  %v961_v26 = vpack.c.bf16 %v933_v18, %v931_v12 }
 0x179   : > { %v727_v22 = vpop.f32.mrf.mxu0 }
 0x17a   : > { %v962_v23 = vpack.c.bf16 %v934_v20, %v932_v13  ;;  %v1735_v24 = vpack.c.bf16 %v934_v20, %v933_v18  ;;  %v904_v25 = vadd.f32 %v2386_v54, %v727_v22  ;;  %v935_v28 = vmax.f32 %v903_v21, 0.0 }
 0x17b   : > { %v729_v27 = vpop.f32.mrf.mxu0 }
 0x17c   : > { %1058 = vst [vmem:[%s2393_s19 + $0x18] sm:$0xff] %v1735_v24  ;;  %v936_v29 = vmax.f32 %v904_v25, 0.0  ;;  %v905_v30 = vadd.f32 %v2382_v53, %v729_v27  ;;  %1317 = vmatprep.mubr.bf16.mxu1 %v962_v23 }
 0x17d   : > { %v731_v31 = vpop.f32.mrf.mxu0  ;;  %1318 = vmatmul.mubr.bf16.gmra.mxu1 %v961_v26 }
 0x17e   : > { %v1736_v32 = vpack.c.bf16 %v936_v29, %v935_v28  ;;  %v906_v33 = vadd.f32 %v2386_v54, %v731_v31  ;;  %v937_v34 = vmax.f32 %v905_v30, 0.0 }
 0x17f   : > { %v735_v35 = vpop.f32.mrf.mxu0 }
 0x180   : > { %1059 = vst [vmem:[%s2393_s19 + $0x20] sm:$0xff] %v1736_v32  ;;  %v938_v36 = vmax.f32 %v906_v33, 0.0  ;;  %v907_v37 = vadd.f32 %v2382_v53, %v735_v35  ;;  %v963_v42 = vpack.c.bf16 %v937_v34, %v935_v28 }
 0x181   : > { %v737_v38 = vpop.f32.mrf.mxu0 }
 0x182   : > { %v964_v39 = vpack.c.bf16 %v938_v36, %v936_v29  ;;  %v1737_v40 = vpack.c.bf16 %v938_v36, %v937_v34  ;;  %v908_v41 = vadd.f32 %v2386_v54, %v737_v38  ;;  %v939_v44 = vmax.f32 %v907_v37, 0.0 }
 0x183   : > { %v739_v43 = vpop.f32.mrf.mxu0 }
 0x184   : > { %1060 = vst [vmem:[%s2393_s19 + $0x28] sm:$0xff] %v1737_v40  ;;  %v940_v45 = vmax.f32 %v908_v41, 0.0  ;;  %v909_v46 = vadd.f32 %v2382_v53, %v739_v43  ;;  %1327 = vmatprep.mubr.bf16.mxu1 %v964_v39 }
 0x185   : > { %v741_v47 = vpop.f32.mrf.mxu0  ;;  %1328 = vmatmul.mubr.bf16.gmra.mxu1 %v963_v42 }
 0x186   : > { %v1738_v48 = vpack.c.bf16 %v940_v45, %v939_v44  ;;  %v910_v51 = vadd.f32 %v2386_v54, %v741_v47  ;;  %v941_v55 = vmax.f32 %v909_v46, 0.0 }
 0x187   : > { %v745_v56 = vpop.f32.mrf.mxu0 }
 0x188   : > { %1061 = vst [vmem:[%s2393_s19 + $0x30] sm:$0xff] %v1738_v48  ;;  %v942_v57 = vmax.f32 %v910_v51, 0.0  ;;  %v911_v58 = vadd.f32 %v2382_v53, %v745_v56  ;;  %v965_v63 = vpack.c.bf16 %v941_v55, %v939_v44 }
 0x189   : > { %v747_v59 = vpop.f32.mrf.mxu0 }
 0x18a   : > { %v966_v60 = vpack.c.bf16 %v942_v57, %v940_v45  ;;  %v1739_v61 = vpack.c.bf16 %v942_v57, %v941_v55  ;;  %v912_v62 = vadd.f32 %v2386_v54, %v747_v59  ;;  %v943_v1 = vmax.f32 %v911_v58, 0.0 }
 0x18b   : > { %v749_v0 = vpop.f32.mrf.mxu0 }
 0x18c   : > { %1062 = vst [vmem:[%s2393_s19 + $0x38] sm:$0xff] %v1739_v61  ;;  %v944_v2 = vmax.f32 %v912_v62, 0.0  ;;  %v913_v3 = vadd.f32 %v2382_v53, %v749_v0  ;;  %1337 = vmatprep.mubr.bf16.mxu1 %v966_v60 }
 0x18d   : > { %v751_v4 = vpop.f32.mrf.mxu0  ;;  %1338 = vmatmul.mubr.bf16.gmra.mxu1 %v965_v63 }
 0x18e   : > { %v1740_v5 = vpack.c.bf16 %v944_v2, %v943_v1  ;;  %v914_v6 = vadd.f32 %v2386_v54, %v751_v4  ;;  %v945_v7 = vmax.f32 %v913_v3, 0.0 }
 0x18f   : > { %v755_v8 = vpop.f32.mrf.mxu0 }
 0x190   : > { %1063 = vst [vmem:[%s2393_s19 + $0x40] sm:$0xff] %v1740_v5  ;;  %v946_v9 = vmax.f32 %v914_v6, 0.0  ;;  %v915_v10 = vadd.f32 %v2382_v53, %v755_v8  ;;  %v967_v15 = vpack.c.bf16 %v945_v7, %v943_v1 }
 0x191   : > { %v757_v11 = vpop.f32.mrf.mxu0 }
 0x192   : > { %v968_v12 = vpack.c.bf16 %v946_v9, %v944_v2  ;;  %v1741_v13 = vpack.c.bf16 %v946_v9, %v945_v7  ;;  %v916_v14 = vadd.f32 %v2386_v54, %v757_v11  ;;  %v947_v17 = vmax.f32 %v915_v10, 0.0 }
 0x193   : > { %v759_v16 = vpop.f32.mrf.mxu0 }
 0x194   : > { %1064 = vst [vmem:[%s2393_s19 + $0x48] sm:$0xff] %v1741_v13  ;;  %v948_v18 = vmax.f32 %v916_v14, 0.0  ;;  %v917_v19 = vadd.f32 %v2382_v53, %v759_v16  ;;  %1347 = vmatprep.mubr.bf16.mxu1 %v968_v12 }
 0x195   : > { %v761_v20 = vpop.f32.mrf.mxu0  ;;  %1348 = vmatmul.mubr.bf16.gmra.mxu1 %v967_v15 }
 0x196   : > { %v1742_v21 = vpack.c.bf16 %v948_v18, %v947_v17  ;;  %v918_v22 = vadd.f32 %v2386_v54, %v761_v20  ;;  %v949_v23 = vmax.f32 %v917_v19, 0.0 }
 0x197   : > { %v765_v24 = vpop.f32.mrf.mxu0 }
 0x198   : > { %1065 = vst [vmem:[%s2393_s19 + $0x50] sm:$0xff] %v1742_v21  ;;  %v950_v25 = vmax.f32 %v918_v22, 0.0  ;;  %v919_v26 = vadd.f32 %v2382_v53, %v765_v24  ;;  %v969_v31 = vpack.c.bf16 %v949_v23, %v947_v17 }
 0x199   : > { %v767_v27 = vpop.f32.mrf.mxu0 }
 0x19a   : > { %v970_v28 = vpack.c.bf16 %v950_v25, %v948_v18  ;;  %v1743_v29 = vpack.c.bf16 %v950_v25, %v949_v23  ;;  %v920_v30 = vadd.f32 %v2386_v54, %v767_v27  ;;  %v951_v33 = vmax.f32 %v919_v26, 0.0 }
 0x19b   : > { %v769_v32 = vpop.f32.mrf.mxu0 }
 0x19c   : > { %1066 = vst [vmem:[%s2393_s19 + $0x58] sm:$0xff] %v1743_v29  ;;  %v952_v34 = vmax.f32 %v920_v30, 0.0  ;;  %v921_v35 = vadd.f32 %v2382_v53, %v769_v32  ;;  %1357 = vmatprep.mubr.bf16.mxu1 %v970_v28 }
 0x19d   : > { %v771_v36 = vpop.f32.mrf.mxu0  ;;  %1358 = vmatmul.mubr.bf16.gmra.mxu1 %v969_v31 }
 0x19e   : > { %v1744_v37 = vpack.c.bf16 %v952_v34, %v951_v33  ;;  %v922_v38 = vadd.f32 %v2386_v54, %v771_v36  ;;  %v953_v39 = vmax.f32 %v921_v35, 0.0 }
 0x19f   : > { %v775_v40 = vpop.f32.mrf.mxu0 }
 0x1a0   : > { %1067 = vst [vmem:[%s2393_s19 + $0x60] sm:$0xff] %v1744_v37  ;;  %v954_v41 = vmax.f32 %v922_v38, 0.0  ;;  %v923_v42 = vadd.f32 %v2382_v53, %v775_v40  ;;  %v971_v47 = vpack.c.bf16 %v953_v39, %v951_v33 }
 0x1a1   : > { %v777_v43 = vpop.f32.mrf.mxu0 }
 0x1a2   : > { %v972_v44 = vpack.c.bf16 %v954_v41, %v952_v34  ;;  %v1745_v45 = vpack.c.bf16 %v954_v41, %v953_v39  ;;  %v924_v46 = vadd.f32 %v2386_v54, %v777_v43  ;;  %v955_v51 = vmax.f32 %v923_v42, 0.0 }
 0x1a3   : > { %v779_v48 = vpop.f32.mrf.mxu0 }
 0x1a4   : > { %1068 = vst [vmem:[%s2393_s19 + $0x68] sm:$0xff] %v1745_v45  ;;  %v956_v55 = vmax.f32 %v924_v46, 0.0  ;;  %v925_v56 = vadd.f32 %v2382_v53, %v779_v48  ;;  %1367 = vmatprep.mubr.bf16.mxu1 %v972_v44  ;;  %v1103_v53 = vld [vmem:[%s2633_s4] sm:$0x3] }
 0x1a5   : > { %v781_v57 = vpop.f32.mrf.mxu0  ;;  %1368 = vmatmul.mubr.bf16.gmra.mxu1 %v971_v47  ;;  %v2444_v1 = vrot.slane %v1103_v53, %v887_v50 }
 0x1a6   : > { %v1746_v58 = vpack.c.bf16 %v956_v55, %v955_v51  ;;  %v926_v59 = vadd.f32 %v2386_v54, %v781_v57  ;;  %v957_v60 = vmax.f32 %v925_v56, 0.0  ;;  %v2448_v54 = vrot.slane %v1103_v53, %v891_v52 }
 0x1a8   : > { %1069 = vst [vmem:[%s2393_s19 + $0x70] sm:$0xff] %v1746_v58  ;;  %v958_v61 = vmax.f32 %v926_v59, 0.0  ;;  %v973_v0 = vpack.c.bf16 %v957_v60, %v955_v51 }
 0x1aa   : > { %v974_v62 = vpack.c.bf16 %v958_v61, %v956_v55  ;;  %v1747_v63 = vpack.c.bf16 %v958_v61, %v957_v60 }
 0x1ac   : > { %1070 = vst [vmem:[%s2393_s19 + $0x78] sm:$0xff] %v1747_v63  ;;  %1377 = vmatprep.mubr.bf16.mxu1 %v974_v62 }
 0x1ad   : > { %1378 = vmatmul.mubr.bf16.gmra.mxu1 %v973_v0 }
 0x235   : > { %v1309_v2 = vpop.f32.mrf.mxu1 }
 0x236   : > { %v1310_v3 = vadd.f32 %v1309_v2, %v2444_v1 }
 0x237   : > { %v1311_v4 = vpop.f32.mrf.mxu1 }
 0x238   : > { %1388 = vst [vmem:[%s2453_s15] sm:$0xff] %v1310_v3  ;;  %v1312_v50 = vadd.f32 %v1311_v4, %v2448_v54 }
 0x239   : > { %v1313_v5 = vpop.f32.mrf.mxu1 }
 0x23a   : > { %1389 = vst [vmem:[%s2453_s15 + $0x8] sm:$0xff] %v1312_v50  ;;  %v1314_v49 = vadd.f32 %v1313_v5, %v2444_v1 }
 0x23b   : > { %v1315_v52 = vpop.f32.mrf.mxu1 }
 0x23c   : > { %1390 = vst [vmem:[%s2453_s15 + $0x10] sm:$0xff] %v1314_v49  ;;  %v1316_v6 = vadd.f32 %v1315_v52, %v2448_v54 }
 0x23d   : > { %v1319_v7 = vpop.f32.mrf.mxu1 }
 0x23e   : > { %1391 = vst [vmem:[%s2453_s15 + $0x18] sm:$0xff] %v1316_v6  ;;  %v1320_v8 = vadd.f32 %v1319_v7, %v2444_v1 }
 0x23f   : > { %v1321_v9 = vpop.f32.mrf.mxu1 }
 0x240   : > { %1392 = vst [vmem:[%s2453_s15 + $0x20] sm:$0xff] %v1320_v8  ;;  %v1322_v10 = vadd.f32 %v1321_v9, %v2448_v54 }
 0x241   : > { %v1323_v11 = vpop.f32.mrf.mxu1 }
 0x242   : > { %1393 = vst [vmem:[%s2453_s15 + $0x28] sm:$0xff] %v1322_v10  ;;  %v1324_v12 = vadd.f32 %v1323_v11, %v2444_v1 }
 0x243   : > { %v1325_v13 = vpop.f32.mrf.mxu1 }
 0x244   : > { %1394 = vst [vmem:[%s2453_s15 + $0x30] sm:$0xff] %v1324_v12  ;;  %v1326_v14 = vadd.f32 %v1325_v13, %v2448_v54 }
 0x245   : > { %v1329_v15 = vpop.f32.mrf.mxu1 }
 0x246   : > { %1395 = vst [vmem:[%s2453_s15 + $0x38] sm:$0xff] %v1326_v14  ;;  %v1330_v16 = vadd.f32 %v1329_v15, %v2444_v1 }
 0x247   : > { %v1331_v17 = vpop.f32.mrf.mxu1 }
 0x248   : > { %1396 = vst [vmem:[%s2453_s15 + $0x40] sm:$0xff] %v1330_v16  ;;  %v1332_v18 = vadd.f32 %v1331_v17, %v2448_v54 }
 0x249   : > { %v1333_v19 = vpop.f32.mrf.mxu1 }
 0x24a   : > { %1397 = vst [vmem:[%s2453_s15 + $0x48] sm:$0xff] %v1332_v18  ;;  %v1334_v20 = vadd.f32 %v1333_v19, %v2444_v1 }
 0x24b   : > { %v1335_v21 = vpop.f32.mrf.mxu1 }
 0x24c   : > { %1398 = vst [vmem:[%s2453_s15 + $0x50] sm:$0xff] %v1334_v20  ;;  %v1336_v22 = vadd.f32 %v1335_v21, %v2448_v54 }
 0x24d   : > { %v1339_v23 = vpop.f32.mrf.mxu1 }
 0x24e   : > { %1399 = vst [vmem:[%s2453_s15 + $0x58] sm:$0xff] %v1336_v22  ;;  %v1340_v24 = vadd.f32 %v1339_v23, %v2444_v1 }
 0x24f   : > { %v1341_v25 = vpop.f32.mrf.mxu1 }
 0x250   : > { %1400 = vst [vmem:[%s2453_s15 + $0x60] sm:$0xff] %v1340_v24  ;;  %v1342_v26 = vadd.f32 %v1341_v25, %v2448_v54 }
 0x251   : > { %v1343_v27 = vpop.f32.mrf.mxu1 }
 0x252   : > { %1401 = vst [vmem:[%s2453_s15 + $0x68] sm:$0xff] %v1342_v26  ;;  %v1344_v28 = vadd.f32 %v1343_v27, %v2444_v1 }
 0x253   : > { %v1345_v29 = vpop.f32.mrf.mxu1 }
 0x254   : > { %1402 = vst [vmem:[%s2453_s15 + $0x70] sm:$0xff] %v1344_v28  ;;  %v1346_v30 = vadd.f32 %v1345_v29, %v2448_v54 }
 0x255   : > { %v1349_v31 = vpop.f32.mrf.mxu1 }
 0x256   : > { %1403 = vst [vmem:[%s2453_s15 + $0x78] sm:$0xff] %v1346_v30  ;;  %v1350_v32 = vadd.f32 %v1349_v31, %v2444_v1 }
 0x257   : > { %v1351_v33 = vpop.f32.mrf.mxu1 }
 0x258   : > { %1404 = vst [vmem:[%s2453_s15 + $0x80] sm:$0xff] %v1350_v32  ;;  %v1352_v34 = vadd.f32 %v1351_v33, %v2448_v54 }
 0x259   : > { %v1353_v35 = vpop.f32.mrf.mxu1 }
 0x25a   : > { %1405 = vst [vmem:[%s2453_s15 + $0x88] sm:$0xff] %v1352_v34  ;;  %v1354_v36 = vadd.f32 %v1353_v35, %v2444_v1 }
 0x25b   : > { %v1355_v37 = vpop.f32.mrf.mxu1 }
 0x25c   : > { %1406 = vst [vmem:[%s2453_s15 + $0x90] sm:$0xff] %v1354_v36  ;;  %v1356_v38 = vadd.f32 %v1355_v37, %v2448_v54 }
 0x25d   : > { %v1359_v39 = vpop.f32.mrf.mxu1 }
 0x25e   : > { %1407 = vst [vmem:[%s2453_s15 + $0x98] sm:$0xff] %v1356_v38  ;;  %v1360_v40 = vadd.f32 %v1359_v39, %v2444_v1 }
 0x25f   : > { %v1361_v41 = vpop.f32.mrf.mxu1 }
 0x260   : > { %1408 = vst [vmem:[%s2453_s15 + $0xa0] sm:$0xff] %v1360_v40  ;;  %v1362_v42 = vadd.f32 %v1361_v41, %v2448_v54 }
 0x261   : > { %v1363_v43 = vpop.f32.mrf.mxu1 }
 0x262   : > { %1409 = vst [vmem:[%s2453_s15 + $0xa8] sm:$0xff] %v1362_v42  ;;  %v1364_v44 = vadd.f32 %v1363_v43, %v2444_v1 }
 0x263   : > { %v1365_v45 = vpop.f32.mrf.mxu1 }
 0x264   : > { %1410 = vst [vmem:[%s2453_s15 + $0xb0] sm:$0xff] %v1364_v44  ;;  %v1366_v46 = vadd.f32 %v1365_v45, %v2448_v54 }
 0x265   : > { %v1369_v47 = vpop.f32.mrf.mxu1 }
 0x266   : > { %1411 = vst [vmem:[%s2453_s15 + $0xb8] sm:$0xff] %v1366_v46  ;;  %v1370_v48 = vadd.f32 %v1369_v47, %v2444_v1 }
 0x267   : > { %v1371_v51 = vpop.f32.mrf.mxu1 }
 0x268   : > { %1412 = vst [vmem:[%s2453_s15 + $0xc0] sm:$0xff] %v1370_v48  ;;  %v1372_v55 = vadd.f32 %v1371_v51, %v2448_v54 }
 0x269   : > { %v1373_v56 = vpop.f32.mrf.mxu1 }
 0x26a   : > { %1413 = vst [vmem:[%s2453_s15 + $0xc8] sm:$0xff] %v1372_v55  ;;  %v1374_v57 = vadd.f32 %v1373_v56, %v2444_v1 }
 0x26b   : > { %v1375_v58 = vpop.f32.mrf.mxu1 }
 0x26c   : > { %1414 = vst [vmem:[%s2453_s15 + $0xd0] sm:$0xff] %v1374_v57  ;;  %v1376_v59 = vadd.f32 %v1375_v58, %v2448_v54 }
 0x26d   : > { %v1379_v60 = vpop.f32.mrf.mxu1 }
 0x26e   : > { %1415 = vst [vmem:[%s2453_s15 + $0xd8] sm:$0xff] %v1376_v59  ;;  %v1380_v61 = vadd.f32 %v1379_v60, %v2444_v1 }
 0x26f   : > { %v1381_v62 = vpop.f32.mrf.mxu1 }
 0x270   : > { %1416 = vst [vmem:[%s2453_s15 + $0xe0] sm:$0xff] %v1380_v61  ;;  %v1382_v63 = vadd.f32 %v1381_v62, %v2448_v54 }
 0x271   : > { %v1383_v0 = vpop.f32.mrf.mxu1 }
 0x272   : > { %1417 = vst [vmem:[%s2453_s15 + $0xe8] sm:$0xff] %v1382_v63  ;;  %v1384_v53 = vadd.f32 %v1383_v0, %v2444_v1  ;;  %1432 = sbr.rel (!%p2650_p0) target bundleno = 658 (0x292), region = 64 }
 0x273   : > { %v1385_v2 = vpop.f32.mrf.mxu1 }
 0x274   : > { %1418 = vst [vmem:[%s2453_s15 + $0xf0] sm:$0xff] %v1384_v53  ;;  %v1386_v3 = vadd.f32 %v1385_v2, %v2448_v54 }
 0x276   : > { %1419 = vst [vmem:[%s2453_s15 + $0xf8] sm:$0xff] %v1386_v3 }
 0x277   : > { %s2663_s16 = smov (!%p1435_p3, %s1434_s16), 16 }
 0x278   : > { %s2523_s18 = sshll.u32 %s2663_s16, 7 }
 0x279   : > { %s1440_s28 = ssub.s32 2048, %s2523_s18 }
 0x27a   : > { %1441 = vsyncadd %s1421_s17, %s1440_s28  ;;  %p1714_p10 = scmp.ne.s32.totalorder %s2523_s18, 0  ;;  %s1750_s7 = sshll.u32 %s2122_s24, 11 }
 0x27b   : > { %s2533_s14 = scalar_lea.hbm %s2634_s5, %s1750_s7  ;;  %s1447_s27 = sshll.u32 %s2393_s19, 4  ;;  %s2536_s27 = int_to_ptr.vmem [resolvable:$true] %s1447_s27 }
 0x27c   : > { %s2016_s30 = scalar_lea.vmem %s2536_s27, %s2523_s18  ;;  %s2139_s1 = smov [#allocation9]  }
 0x27d   : > { %p2017_p13 = scmp.ne.s32.totalorder %s2536_s27, %s2016_s30  ;;  %s2020_s16 = sshll.u32 %s2139_s1, 4  ;;  %s2021_s16 = int_to_ptr.vmem [resolvable:$false] %s2020_s16 }
 0x27e   : > { %s2022_s28 = scalar_lea.vmem %s2021_s16, 4096  ;;  %p2023_p7 = scmp.lt.s32.totalorder %s2536_s27, %s2021_s16 }
 0x27f   : > { %p2018_p1 = pnand %p2017_p13, %p1714_p10  ;;  %p2024_p12 = scmp.lt.s32.totalorder %s2022_s28, %s2016_s30 }
 0x281   : > { %p2019_p6 = pneg %p2018_p1  ;;  %p2025_p11 = por %p2024_p12, %p2023_p7 }
 0x283   : > { %p2026_p5 = pnand %p2025_p11, %p2019_p6 }
 0x285   : > { %2029 = shalt.err (!%p2026_p5)
}
 0x286   : > { %s2030_s19 = scalar_lea.hbm %s2533_s14, %s2523_s18  ;;  %s2034_s10 = scalar_lea.hbm %s2634_s5, 3200 }
 0x287   : > { %p2031_p8 = scmp.ne.s32.totalorder %s2533_s14, %s2030_s19  ;;  %p2035_p0 = scmp.lt.s32.totalorder %s2533_s14, %s2634_s5 }
 0x288   : > { %p2036_p3 = scmp.lt.s32.totalorder %s2034_s10, %s2030_s19 }
 0x289   : > { %p2032_p2 = pnand %p2031_p8, %p1714_p10 }
 0x28a   : > { %p2037_p13 = por %p2036_p3, %p2035_p0 }
 0x28b   : > { %p2033_p4 = pneg %p2032_p2 }
 0x28d   : > { %p2038_p1 = pnand %p2037_p13, %p2033_p4 }
 0x28f   : > { %2041 = shalt.err (!%p2038_p1)
}
 0x290   : > { %s2140_s30 = smov 128   ;;  %s2141_s28 = smov 8  }
 0x291   : > { %1453 = dma.vmem_to_hbm [thread:$0]  (%p1714_p10), %s2536_s27, %s2523_s18, %s2533_s14, %s1421_s17, %s2140_s30, %s2140_s30, %s2141_s28  }
 0x292 PF: > { %p2651_p6 = scmp.ne.s32.totalorder %s2643_s11, 0 }
 0x293   : > { %s1719_s19 = sshll.u32 (%p2651_p6), %s2122_s24, 4 }
 0x294   : > { %1456 = sbr.rel (!%p2651_p6) target bundleno = 692 (0x2b4), region = 68  ;;  %s1458_s7 = ssub.s32 (%p2651_p6), 25, %s1719_s19 }
 0x295   : > { %p1459_p7 = scmp.lt.s32.totalorder (%p2651_p6), %s1458_s7, 16 }
 0x299   : > { %s2665_s7 = smov (!%p1459_p7, %s1458_s7), 16 }
 0x29a   : > { %s2566_s8 = sshll.u32 %s2665_s7, 8 }
 0x29b   : > { %s1464_s10 = ssub.s32 4096, %s2566_s8 }
 0x29c   : > { %1465 = vsyncadd %s1426_s20, %s1464_s10  ;;  %p1722_p10 = scmp.ne.s32.totalorder %s2566_s8, 0  ;;  %s1753_s11 = sshll.u32 %s2122_s24, 12 }
 0x29d   : > { %s2576_s14 = scalar_lea.hbm %s2635_s6, %s1753_s11  ;;  %s1471_s27 = sshll.u32 %s2453_s15, 4  ;;  %s2579_s27 = int_to_ptr.vmem [resolvable:$true] %s1471_s27 }
 0x29e   : > { %s2042_s1 = scalar_lea.vmem %s2579_s27, %s2566_s8  ;;  %s2142_s16 = smov [#allocation10]  }
 0x29f   : > { %p2043_p12 = scmp.ne.s32.totalorder %s2579_s27, %s2042_s1  ;;  %s2046_s30 = sshll.u32 %s2142_s16, 4  ;;  %s2047_s30 = int_to_ptr.vmem [resolvable:$false] %s2046_s30 }
 0x2a0   : > { %s2048_s24 = scalar_lea.vmem %s2047_s30, 8192  ;;  %p2049_p8 = scmp.lt.s32.totalorder %s2579_s27, %s2047_s30 }
 0x2a1   : > { %p2044_p11 = pnand %p2043_p12, %p1722_p10  ;;  %p2050_p2 = scmp.lt.s32.totalorder %s2048_s24, %s2042_s1 }
 0x2a3   : > { %p2045_p5 = pneg %p2044_p11  ;;  %p2051_p4 = por %p2050_p2, %p2049_p8 }
 0x2a5   : > { %p2052_p0 = pnand %p2051_p4, %p2045_p5 }
 0x2a7   : > { %2055 = shalt.err (!%p2052_p0)
}
 0x2a8   : > { %s2056_s15 = scalar_lea.hbm %s2576_s14, %s2566_s8  ;;  %s2060_s7 = scalar_lea.hbm %s2635_s6, 6400 }
 0x2a9   : > { %p2057_p3 = scmp.ne.s32.totalorder %s2576_s14, %s2056_s15  ;;  %p2061_p6 = scmp.lt.s32.totalorder %s2576_s14, %s2635_s6 }
 0x2aa   : > { %p2062_p7 = scmp.lt.s32.totalorder %s2060_s7, %s2056_s15 }
 0x2ab   : > { %p2058_p13 = pnand %p2057_p3, %p1722_p10 }
 0x2ac   : > { %p2063_p12 = por %p2062_p7, %p2061_p6 }
 0x2ad   : > { %p2059_p1 = pneg %p2058_p13 }
 0x2af   : > { %p2064_p11 = pnand %p2063_p12, %p2059_p1 }
 0x2b1   : > { %2067 = shalt.err (!%p2064_p11)
}
 0x2b2   : > { %s2143_s17 = smov 256   ;;  %s2144_s18 = smov 16  }
 0x2b3   : > { %1477 = dma.vmem_to_hbm [thread:$0]  (%p1722_p10), %s2579_s27, %s2566_s8, %s2576_s14, %s1426_s20, %s2143_s17, %s2143_s17, %s2144_s18  }
 0x2b4 PF: > { %s1486_s1 = sand.u32 1, %s2110_s21   ;;  %p2652_p5 = scmp.ne.s32.totalorder %s2644_s13, 0 }
 0x2b5   : > { %s1487_s16 = scalar_lea.sflag [#allocation5], %s1486_s1 }
 0x2b6   : > { %p1773_p8 = pnand %p1613_p9, %p2652_p5 }
 0x2b8   : > { %p1774_p2 = pneg %p1773_p8 }
 0x2ba   : > { %2101 = dma.done.wait (%p1774_p2), %s1487_s16, 2048  }
 0x2bb   : > { %2103 = vsyncadd (%p1774_p2), %s1487_s16, 4294965248  ;;  %s1496_s30 = scalar_lea.sflag [#allocation11], %s1486_s1 }
 0x2bc   : > { %2105 = dma.done.wait (%p1774_p2), %s1496_s30, 4096  }
 0x2bd   : > { %2107 = vsyncadd (%p1774_p2), %s1496_s30, 4294963200  ;;  %s27_s26 = sadd.s32 1, %s2130_s26   ;;  %s2653_s21 = smov %s2114_s22 }
 0x2be   : > { %p24_p4 = scmp.ge.s32.totalorder %s27_s26, 4   ;;  %s2654_s22 = smov %s2118_s23 }
 0x2bf   : > { %s2655_s23 = smov %s2242_s12  ;;  %s2656_s24 = smov %s2126_s25 }
 0x2c0   : > { %s2657_s25 = smov %s2659_s29  ;;  %26 = sbr.rel (!%p24_p4) target bundleno = 11 (0xb), region = 119 }
 0x2c5   :  { %1501 = vsyncpa [#allocation4], 1 }
 0x2c6   :  { %1503 = vsyncpa [#allocation4 + $0x1], 1 }
 0x2c7   :  { %1504 = vsyncpa [#allocation7], 1 }
 0x2c8   :  { %1505 = vsyncpa [#allocation5], 1 }
 0x2c9   :  { %1507 = vsyncpa [#allocation5 + $0x1], 1 }
 0x2ca   :  { %1508 = vsyncpa [#allocation11], 1 }
 0x2cb   :  { %1510 = vsyncpa [#allocation11 + $0x1], 1 }

</bundles_post_ra>
